<compile_context>
chip_gen: v7x
topology: tpu7x:2x2x1
jax: 0.10.0
libtpu: 0.0.40
codegen_flags: <defaults>
</compile_context>

<pallas_src>
import jax
import jax.numpy as jnp
from jax.experimental import pallas as pl
from jax.experimental.pallas import tpu as pltpu

LANE = 128                     # lane width (last-dim tiling)
SUBLANE = 8                    # f32 sublane width (second-to-last-dim tiling)
NEG_INF = -1e30                # softmax mask for padded K rows (not -inf: avoids inf-inf NaN)
VMEM_LIMIT_BYTES = 48 * 1024 * 1024     # safe on v5e/v6e (128 MiB) and v7x (64 MiB physical)
VMEM_DATA_BUDGET = 24 * 1024 * 1024     # budget for pipeline buffers + spilled intermediates


def _round_up(v, m):
    return (v + m - 1) // m * m


def _cdiv(a, b):
    return -(-a // b)


def attention_block_kernel(x_ref, w1_ref, b1_ref, w2_ref, b2_ref, o_ref):
    # x_ref : (TB, C)    input rows (conv channel axis), TB = batch tile
    # w1_ref: (C, F)     conv1d weight (kernel_size=1), pre-transposed
    # b1_ref: (1, F)     conv1d bias
    # w2_ref: (F, KP)    linear weight, pre-transposed, zero-padded to KP sublanes
    # b2_ref: (1, KP)    linear bias, padded entries = -1e30
    # o_ref : (KP, TB)   K-major output: batch on the lane axis (dense, unmasked stores)
    x = x_ref[...]
    h = jnp.dot(x, w1_ref[...], preferred_element_type=jnp.float32) + b1_ref[...]
    h = jnp.maximum(h, 0.0)                                            # ReLU
    logits = jnp.dot(h, w2_ref[...], preferred_element_type=jnp.float32) + b2_ref[...]
    # Softmax over the (padded) K axis; padded cols have logit -1e30 -> exp underflows to 0.
    m = jnp.max(logits, axis=1, keepdims=True)
    e = jnp.exp(logits - m)
    denom = jnp.sum(e, axis=1, keepdims=True)
    probs = e * pl.reciprocal(denom, approx=False)                     # (TB, KP), exact recip
    # Tiny XLU transpose so the HBM store is K-major / lane-dense over the batch.
    o_ref[...] = jnp.transpose(probs).astype(o_ref.dtype)              # (KP, TB)


def prepare_attention_params(conv_w, conv_b, lin_w, lin_b):
    """One-time preprocessing (hoisted out of the per-call path)."""
    F_ = conv_w.shape[0]                       # base_nf
    K = lin_w.shape[0]                         # num_input
    KP = _round_up(max(K, 1), SUBLANE)         # pad K to a full f32 sublane group
    w1 = jnp.asarray(conv_w[:, :, 0], jnp.float32).T               # (C, F)
    b1 = jnp.asarray(conv_b, jnp.float32).reshape(1, F_)            # (1, F)
    w2 = jnp.zeros((F_, KP), jnp.float32).at[:, :K].set(jnp.asarray(lin_w, jnp.float32).T)
    b2 = jnp.full((1, KP), NEG_INF, jnp.float32).at[0, :K].set(jnp.asarray(lin_b, jnp.float32))
    return {"w1": w1, "b1": b1, "w2": w2, "b2": b2, "K": K, "KP": KP}


def _choose_tiling(B, C, KP, max_block_b):
    """Pick (TB, grid): big tiles, VMEM-capped, even tile count for v7x TC balance."""
    B8 = _round_up(B, SUBLANE)
    # Per-row VMEM: double-buffered x block + out block + ~5 lane-padded f32 intermediates.
    bytes_per_row = 4 * (2 * C + 2 * KP) + 5 * LANE * 4
    tb_cap = max(LANE, (VMEM_DATA_BUDGET // bytes_per_row) // LANE * LANE)
    eff_max = max(LANE, min(max_block_b, tb_cap))

    if B8 <= LANE:                              # tiny batch: one tile, no lane padding games
        return B8, 1

    tiles = max(2, _cdiv(B8, eff_max))          # >=2 tiles so both v7x TensorCores get work
    if tiles % 2:
        tiles += 1
    TB = _round_up(_cdiv(B8, tiles), LANE)      # lane-dense output tile => TB multiple of 128
    grid = _cdiv(B8, TB)
    if grid > 1 and grid % 2:
        # Prefer an even tile count: shrink TB one notch if that yields an even grid.
        alt_tb = _round_up(_cdiv(B8, grid + 1), LANE)
        if _cdiv(B8, alt_tb) % 2 == 0:
            TB, grid = alt_tb, _cdiv(B8, alt_tb)
    return TB, grid


def attention_block(x_ncl, params, *, max_block_b=4096):
    """x_ncl: (B, in_nc, 1) float32 — mirrors the PyTorch NCL input."""
    B, C, L = x_ncl.shape
    assert L == 1, "AttentionBlock in Arch is called with length-1 sequences"
    w1, b1, w2, b2 = params["w1"], params["b1"], params["w2"], params["b2"]
    K, KP = params["K"], params["KP"]
    F_ = w1.shape[1]

    x2d = x_ncl[:, :, 0].astype(jnp.float32)    # (B, C); no wrapper-side padding of x
    TB, grid = _choose_tiling(B, C, KP, max_block_b)
    B_out = grid * TB                           # output is exactly grid*TB (no ragged writes)

    out_t = pl.pallas_call(
        attention_block_kernel,
        out_shape=jax.ShapeDtypeStruct((KP, B_out), jnp.float32),
        grid=(grid,),
        in_specs=[
            pl.BlockSpec((TB, C), lambda i: (i, 0)),     # streamed over B (ragged last tile OK)
            pl.BlockSpec((C, F_), lambda i: (0, 0)),     # VMEM-resident weights (loaded once)
            pl.BlockSpec((1, F_), lambda i: (0, 0)),
            pl.BlockSpec((F_, KP), lambda i: (0, 0)),
            pl.BlockSpec((1, KP), lambda i: (0, 0)),
        ],
        out_specs=pl.BlockSpec((KP, TB), lambda i: (0, i)),
        compiler_params=pltpu.CompilerParams(
            dimension_semantics=("parallel",),            # v7x: shard B-tiles across both TCs
            vmem_limit_bytes=VMEM_LIMIT_BYTES),
    )(x2d, w1, b1, w2, b2)
    # Tiny (K x B) slice + transpose back to the PyTorch (B, K) layout.
    return out_t[:K, :B].T


def _reference(x_ncl, conv_w, conv_b, lin_w, lin_b):
    x2d = x_ncl[:, :, 0]
    h = jnp.maximum(x2d @ conv_w[:, :, 0].T + conv_b, 0.0)
    logits = h @ lin_w.T + lin_b
    return jax.nn.softmax(logits, axis=1)


if __name__ == "__main__":
    # Small shapes consistent with the module: AttentionBlock(in_nc, num_input=3, base_nf=64)
    B, in_nc, num_input, base_nf = 2, 32, 3, 64

    key = jax.random.PRNGKey(0)
    k_x, k_w1, k_b1, k_w2, k_b2, k_x2, k_x3 = jax.random.split(key, 7)

    x = jax.random.normal(k_x, (B, in_nc, 1), dtype=jnp.float32)
    bound1 = 1.0 / (in_nc ** 0.5)
    conv_w = jax.random.uniform(k_w1, (base_nf, in_nc, 1), jnp.float32, -bound1, bound1)
    conv_b = jax.random.uniform(k_b1, (base_nf,), jnp.float32, -bound1, bound1)
    bound2 = 1.0 / (base_nf ** 0.5)
    lin_w = jax.random.uniform(k_w2, (num_input, base_nf), jnp.float32, -bound2, bound2)
    lin_b = jax.random.uniform(k_b2, (num_input,), jnp.float32, -bound2, bound2)

    params = prepare_attention_params(conv_w, conv_b, lin_w, lin_b)   # hoisted, runs once

    # Small-batch check (grid=1, TB=8).
    out = attention_block(x, params)
    out = jax.block_until_ready(out)
    ref = _reference(x, conv_w, conv_b, lin_w, lin_b)
    assert out.shape == (B, num_input)
    assert jnp.allclose(out, ref, atol=1e-5, rtol=1e-5), "mismatch vs reference (small batch)"

    # Medium batch: exercises the ragged last tile and an even 2-tile grid (TB=256, grid=2).
    B_med = 300
    x_med = jax.random.normal(k_x2, (B_med, in_nc, 1), dtype=jnp.float32)
    out_med = attention_block(x_med, params)
    out_med = jax.block_until_ready(out_med)
    ref_med = _reference(x_med, conv_w, conv_b, lin_w, lin_b)
    assert out_med.shape == (B_med, num_input)
    assert jnp.allclose(out_med, ref_med, atol=1e-5, rtol=1e-5), "mismatch vs reference (2 tiles)"

    # Larger batch with a forced small tile: 4 balanced tiles (TB=256, grid=4).
    B_big = 1000
    x_big = jax.random.normal(k_x3, (B_big, in_nc, 1), dtype=jnp.float32)
    out_big = attention_block(x_big, params, max_block_b=256)
    out_big = jax.block_until_ready(out_big)
    ref_big = _reference(x_big, conv_w, conv_b, lin_w, lin_b)
    assert out_big.shape == (B_big, num_input)
    assert jnp.allclose(out_big, ref_big, atol=1e-5, rtol=1e-5), "mismatch vs reference (4 tiles)"

    print("KERNEL_OK")
</pallas_src>

<mosaic_0001>
module attributes {stable_mosaic.version = 11 : i64} {
  func.func @attention_block_kernel(%arg0: i32, %arg1: memref<8x32xf32, #tpu.memory_space<vmem>>, %arg2: memref<32x64xf32, #tpu.memory_space<vmem>>, %arg3: memref<1x64xf32, #tpu.memory_space<vmem>>, %arg4: memref<64x8xf32, #tpu.memory_space<vmem>>, %arg5: memref<1x8xf32, #tpu.memory_space<vmem>>, %arg6: memref<8x8xf32, #tpu.memory_space<vmem>>) attributes {dimension_semantics = [#tpu.dimension_semantics<parallel>], iteration_bounds = array<i64: 1>, scalar_prefetch = 0 : i64, scratch_operands = 0 : i64, tpu.core_type = #tpu.core_type<tc>, window_params = [{transform_indices = @transform_0, window_bounds = array<i64: 8, 32>}, {pipeline_mode = #tpu.pipeline_mode<synchronous>, transform_indices = @transform_1, window_bounds = array<i64: 32, 64>}, {pipeline_mode = #tpu.pipeline_mode<synchronous>, transform_indices = @transform_2, window_bounds = array<i64: 1, 64>}, {pipeline_mode = #tpu.pipeline_mode<synchronous>, transform_indices = @transform_3, window_bounds = array<i64: 64, 8>}, {pipeline_mode = #tpu.pipeline_mode<synchronous>, transform_indices = @transform_4, window_bounds = array<i64: 1, 8>}, {transform_indices = @transform_5, window_bounds = array<i64: 8, 8>}]} {
    %c0 = arith.constant 0 : index
    %c0_0 = arith.constant 0 : index
    %0 = vector.load %arg1[%c0, %c0_0] : memref<8x32xf32, #tpu.memory_space<vmem>>, vector<8x32xf32>
    %c0_1 = arith.constant 0 : index
    %c0_2 = arith.constant 0 : index
    %1 = vector.load %arg2[%c0_1, %c0_2] : memref<32x64xf32, #tpu.memory_space<vmem>>, vector<32x64xf32>
    %cst = arith.constant dense<0.000000e+00> : vector<8x64xf32>
    %2 = tpu.matmul %0, %1, %cst {dimension_numbers = #tpu.dot_dimension_numbers<[1], [0], [0], [1], [0, 0, 1, 1], [], []>} : vector<8x32xf32>, vector<32x64xf32>, vector<8x64xf32> -> vector<8x64xf32>
    %c0_3 = arith.constant 0 : index
    %c0_4 = arith.constant 0 : index
    %3 = vector.load %arg3[%c0_3, %c0_4] : memref<1x64xf32, #tpu.memory_space<vmem>>, vector<1x64xf32>
    %4 = vector.broadcast %3 : vector<1x64xf32> to vector<8x64xf32>
    %5 = arith.addf %2, %4 : vector<8x64xf32>
    %cst_5 = arith.constant 0.000000e+00 : f32
    %6 = vector.broadcast %cst_5 : f32 to vector<8x64xf32>
    %7 = arith.maximumf %5, %6 : vector<8x64xf32>
    %c0_6 = arith.constant 0 : index
    %c0_7 = arith.constant 0 : index
    %8 = vector.load %arg4[%c0_6, %c0_7] : memref<64x8xf32, #tpu.memory_space<vmem>>, vector<64x8xf32>
    %cst_8 = arith.constant dense<0.000000e+00> : vector<8x8xf32>
    %9 = tpu.matmul %7, %8, %cst_8 {dimension_numbers = #tpu.dot_dimension_numbers<[1], [0], [0], [1], [0, 0, 1, 1], [], []>} : vector<8x64xf32>, vector<64x8xf32>, vector<8x8xf32> -> vector<8x8xf32>
    %c0_9 = arith.constant 0 : index
    %c0_10 = arith.constant 0 : index
    %10 = vector.load %arg5[%c0_9, %c0_10] : memref<1x8xf32, #tpu.memory_space<vmem>>, vector<1x8xf32>
    %11 = vector.broadcast %10 : vector<1x8xf32> to vector<8x8xf32>
    %12 = arith.addf %9, %11 : vector<8x8xf32>
    %cst_11 = arith.constant dense<0xFF800000> : vector<8xf32>
    %13 = vector.multi_reduction <maximumf>, %12, %cst_11 [1] : vector<8x8xf32> to vector<8xf32>
    %14 = vector.shape_cast %13 : vector<8xf32> to vector<8x1xf32>
    %15 = vector.broadcast %14 : vector<8x1xf32> to vector<8x8xf32>
    %16 = arith.subf %12, %15 : vector<8x8xf32>
    %17 = math.exp %16 : vector<8x8xf32>
    %cst_12 = arith.constant dense<0.000000e+00> : vector<8xf32>
    %18 = vector.multi_reduction <add>, %17, %cst_12 [1] : vector<8x8xf32> to vector<8xf32>
    %19 = vector.shape_cast %18 : vector<8xf32> to vector<8x1xf32>
    %20 = tpu.reciprocal %19 : vector<8x1xf32> -> vector<8x1xf32>
    %21 = vector.broadcast %20 : vector<8x1xf32> to vector<8x8xf32>
    %22 = arith.mulf %17, %21 : vector<8x8xf32>
    %23 = tpu.transpose %22, [1, 0] : vector<8x8xf32> -> vector<8x8xf32>
    %c0_13 = arith.constant 0 : index
    %c0_14 = arith.constant 0 : index
    %24 = vector.load %arg6[%c0_13, %c0_14] : memref<8x8xf32, #tpu.memory_space<vmem>>, vector<8x8xf32>
    tpu.vector_store %arg6[%c0_13, %c0_14], %23 {strides = array<i32>} : memref<8x8xf32, #tpu.memory_space<vmem>>, vector<8x8xf32>,
    return
  }
  func.func @transform_0(%arg0: i32) -> (i32, i32) {
    %c0_i32 = arith.constant 0 : i32
    %c0_i32_0 = arith.constant 0 : i32
    return %arg0, %c0_i32 : i32, i32
  }
  func.func @transform_1(%arg0: i32) -> (i32, i32) {
    %c0_i32 = arith.constant 0 : i32
    %c0_i32_0 = arith.constant 0 : i32
    %c0_i32_1 = arith.constant 0 : i32
    return %c0_i32, %c0_i32_0 : i32, i32
  }
  func.func @transform_2(%arg0: i32) -> (i32, i32) {
    %c0_i32 = arith.constant 0 : i32
    %c0_i32_0 = arith.constant 0 : i32
    %c0_i32_1 = arith.constant 0 : i32
    return %c0_i32, %c0_i32_0 : i32, i32
  }
  func.func @transform_3(%arg0: i32) -> (i32, i32) {
    %c0_i32 = arith.constant 0 : i32
    %c0_i32_0 = arith.constant 0 : i32
    %c0_i32_1 = arith.constant 0 : i32
    return %c0_i32, %c0_i32_0 : i32, i32
  }
  func.func @transform_4(%arg0: i32) -> (i32, i32) {
    %c0_i32 = arith.constant 0 : i32
    %c0_i32_0 = arith.constant 0 : i32
    %c0_i32_1 = arith.constant 0 : i32
    return %c0_i32, %c0_i32_0 : i32, i32
  }
  func.func @transform_5(%arg0: i32) -> (i32, i32) {
    %c0_i32 = arith.constant 0 : i32
    %c0_i32_0 = arith.constant 0 : i32
    return %c0_i32, %arg0 : i32, i32
  }
}

</mosaic_0001>

<bundles_post_ra>
// kernel: tpu_custom_call.1
= control target key start
LH: loop header
LB: loop body
LE: loop exit
PB: predicated region body
PF: predicated region fallthrough
CT: control target
= control target key end

     0   :  { %v354_v3 = vmov 0.0|0.0   ;;  %vm355_vm0 = vmmov 0   ;;  %v356_v6 = vmov 0.0   ;;  %s448_s0 = inlined_call_operand.vmem [shape: f32[2,32], index: 0, kind: input, shape index: {}]   ;;  %s449_s1 = inlined_call_operand.vmem [shape: f32[32,64], index: 1, kind: input, shape index: {}]   ;;  %s450_s2 = inlined_call_operand.vmem [shape: f32[1,64], index: 2, kind: input, shape index: {}]   ;;  %s451_s3 = inlined_call_operand.vmem [shape: f32[64,8], index: 3, kind: input, shape index: {}]   ;;  %s452_s4 = inlined_call_operand.vmem [shape: f32[1,8], index: 4, kind: input, shape index: {}]   ;;  %s453_s5 = inlined_call_operand.hbm [shape: f32[8,8], index: 5, kind: output, shape index: {}]  }
   0x1   :  { %v22_v0 = vld [vmem:[%s449_s1] sm:$0xff]  ;;  %v23_v1 = vld [vmem:[%s449_s1 + $0x8] sm:$0xff]  ;;  %v24_v2 = vld [vmem:[%s449_s1 + $0x10] sm:$0xff]  ;;  %304 = vmatprep.subr.bf16.mxu0 %v354_v3  ;;  %282 = vmatprep.mubr.msk.f32.mxu0 %vm355_vm0, %v356_v6 }
   0x2   :  { %v305_v4 = vpack.c.bf16 %v23_v1, %v22_v0  ;;  %v25_v5 = vld [vmem:[%s449_s1 + $0x18] sm:$0xff]  ;;  %v108_v7 = vld [vmem:[%s451_s3] sm:$0xff]  ;;  %310 = vmatprep.subr.bf16.mxu1 %v354_v3  ;;  %v109_v8 = vld [vmem:[%s451_s3 + $0x8] sm:$0xff]  ;;  %301 = vmatprep.mubr.msk.f32.mxu1 %vm355_vm0, %v356_v6 }
   0x3   :  { %v110_v9 = vld [vmem:[%s451_s3 + $0x10] sm:$0xff]  ;;  %v111_v10 = vld [vmem:[%s451_s3 + $0x18] sm:$0xff]  ;;  %v308_v11 = vpack.c.bf16 %v25_v5, %v24_v2  ;;  %v311_v12 = vpack.c.bf16 %v109_v8, %v108_v7 }
   0x4   :  { %306 = vmatpush3.bf16.msra.mxu0 %v305_v4 }
   0x5   :  { %307 = vmatprep.subr.bf16.mxu0 %v354_v3 }
   0x6   :  { %10 = vsyncpa [#allocation3], 0  ;;  %312 = vmatpush3.bf16.msra.mxu1 %v311_v12  ;;  %v314_v13 = vpack.c.bf16 %v111_v10, %v110_v9  ;;  %v112_v14 = vld [vmem:[%s451_s3 + $0x20] sm:$0xff]  ;;  %v113_v15 = vld [vmem:[%s451_s3 + $0x28] sm:$0xff]  ;;  %vm33_vm1 = vcmask 261120   ;;  %vm123_vm2 = vcmask 523264  }
   0x7   :  { %313 = vmatprep.subr.bf16.mxu1 %v354_v3  ;;  %v21_v16 = vld [vmem:[%s448_s0] sm:$0xff]  ;;  %v317_v17 = vpack.c.bf16 %v113_v15, %v112_v14  ;;  %v114_v18 = vld [vmem:[%s451_s3 + $0x30] sm:$0xff]  ;;  %v115_v19 = vld [vmem:[%s451_s3 + $0x38] sm:$0xff]  ;;  %vm197_vm3 = vcmask 64512  }
   0x8   :  { %309 = vmatpush3.bf16.msra.mxu0 %v308_v11  ;;  %v320_v20 = vpack.c.bf16 %v115_v19, %v114_v18  ;;  %v256_v21 = vld [vmem:[%s450_s2] ss:$0 sm:$0xff]  ;;  %s357_s2 = smov [#allocation2]  }
   0x9   :  { %v258_v26 = vld [vmem:[%s452_s4] ss:$0 sm:$0xff]  ;;  %s248_s3 = sshll.u32 %s357_s2, 4  ;;  %s249_s3 = int_to_ptr.vmem [resolvable:$true] %s248_s3 }
   0xa   :  { %315 = vmatpush3.bf16.msra.mxu1 %v314_v13  ;;  %s330_s4 = scalar_lea.vmem %s249_s3, 128  ;;  %p335_p1 = scmp.lt.s32.totalorder %s249_s3, %s249_s3 }
   0xb   :  { %283 = vmatmul.mubr.msk.f32.vlgmr.msra.gmra.mrb[0].mxu0 %vm33_vm1, %v21_v16  ;;  %316 = vmatprep.subr.bf16.mxu1 %v354_v3  ;;  %p331_p0 = scmp.ne.s32.totalorder %s249_s3, %s330_s4  ;;  %p336_p2 = scmp.lt.s32.totalorder %s330_s4, %s330_s4 }
   0xd   :  { %p337_p3 = por %p336_p2, %p335_p1 }
   0xe   :  { %318 = vmatpush3.bf16.msra.mxu1 %v317_v17 }
   0xf   :  { %319 = vmatprep.subr.bf16.mxu1 %v354_v3  ;;  %p338_p4 = pnand %p337_p3, %p331_p0 }
  0x12   :  { %321 = vmatpush3.bf16.msra.mxu1 %v320_v20 }
  0xde   :  { %v103_v22 = vpop.f32.mrb[0].mxu0 }
  0xdf   :  { %v104_v23 = vadd.f32 %v256_v21, %v103_v22  ;;  %v284_v24 = vpop.f32.mrb[1].mxu0 }
  0xe1   :  { %v107_v25 = vmax.f32 %v104_v23, 0.0 }
  0xe3   :  { %302 = vmatmul.mubr.msk.f32.vlgmr.msra.gmra.mrb[0].mxu1 %vm123_vm2, %v107_v25 }
 0x1b6   :  { %v193_v27 = vpop.f32.mrb[0].mxu1 }
 0x1b7   :  { %v194_v28 = vadd.f32 %v258_v26, %v193_v27  ;;  %v303_v29 = vpop.f32.mrb[1].mxu1 }
 0x1b9   :  { %v198_v30 = vsel %vm197_vm3, %v194_v28, -inf }
 0x1ba   :  { %199 = vmax.xlane.f32.xlu0 %v198_v30 }
 0x247   :  { %v200_v31 = vpop.xlane.xlu0 %199 }
 0x248   :  { %v201_v32 = vsub.f32 %v194_v28, %v200_v31 }
 0x24a   :  { %v202_v33 = vmul.f32 1.442695, %v201_v32 }
 0x24c   :  { %326 = vpow2.f32 %v202_v33 }
 0x256   :  { %v327_v34 = vpop.eup %326 }
 0x257   :  { %v204_v35 = vsel %vm197_vm3, %v327_v34, 0.0 }
 0x258   :  { %205 = vadd.xlane.f32.xlu0 %v204_v35 }
 0x2e5   :  { %v206_v36 = vpop.xlane.xlu0 %205 }
 0x2e6   :  { %328 = vrcp.f32 %v206_v36 }
 0x2f0   :  { %v329_v37 = vpop.eup %328 }
 0x2f1   :  { %v208_v38 = vmul.f32 %v329_v37, %v327_v34 }
 0x2f3   :  { %209 = vxpose.xlu1.b32.start.end [1/1] (short) (narrow) %v208_v38, 8 }
 0x373   :  { %v225_v39 = vpop.trf.xlu1 }
 0x374   :  { %241 = vst.msk [vmem:[#allocation2] sm:$0xff] %vm197_vm3, %v225_v39 }
 0x375   :  { %341 = shalt.err (!%p338_p4)
}
 0x376   :  { %s342_s23 = scalar_lea.hbm %s453_s5, 128 }
 0x377   :  { %p343_p5 = scmp.ne.s32.totalorder %s453_s5, %s342_s23  ;;  %p346_p6 = scmp.lt.u32.totalorder %s342_s23, %s453_s5 }
 0x379   :  { %p348_p7 = pnand %p346_p6, %p343_p5 }
 0x37b   :  { %351 = shalt.err (!%p348_p7)
}
 0x37c   :  { %251 = dma.vmem_to_hbm [thread:$0]  %s249_s3, 128, %s453_s5, [#allocation3]  }
 0x37d   :  { %352 = dma.done.wait [#allocation3], 128  }
 0x37e   :  { %353 = vsyncadd [#allocation3], 4294967168 }
 0x37f   :  { %255 = vsyncpa [#allocation3], 1 }

</bundles_post_ra>
